<compile_context>
chip_gen: v7x
topology: tpu7x:2x2x1
jax: 0.10.0
libtpu: 0.0.40
codegen_flags: <defaults>
</compile_context>

<pallas_src>
import functools

import jax
import jax.numpy as jnp
from jax import lax
from jax.experimental import pallas as pl
from jax.experimental.pallas import tpu as pltpu

F32 = jnp.float32
BF16 = jnp.bfloat16


def _default_vmem_limit():
    # v7x has 64 MiB of VMEM per TC -> stay <= ~48 MiB; v5e/v6e (128 MiB) can go higher.
    try:
        cap = int(pltpu.get_tpu_info().vmem_capacity_bytes)
        return int(min(cap * 3 // 4, 100 * 1024 * 1024))
    except Exception:
        return 48 * 1024 * 1024


VMEM_LIMIT = _default_vmem_limit()
WHOLE_VMEM = pl.BlockSpec(memory_space=pltpu.MemorySpace.VMEM)


def _round_up(x, m):
    return (x + m - 1) // m * m


def _softplus(x):
    return jnp.maximum(x, 0.0) + jnp.log(1.0 + jnp.exp(-jnp.abs(x)))


# --------------------------------------------------------------------------
# Tiled matmul (bf16 operands, f32 accumulation, gated bf16 store)
# --------------------------------------------------------------------------
def _matmul_kernel(a_ref, b_ref, o_ref, acc_ref):
    @pl.when(pl.program_id(2) == 0)
    def _():
        acc_ref[...] = jnp.zeros_like(acc_ref)

    acc_ref[...] += jnp.dot(a_ref[...], b_ref[...], preferred_element_type=jnp.float32)

    @pl.when(pl.program_id(2) == pl.num_programs(2) - 1)
    def _():
        o_ref[...] = acc_ref[...].astype(o_ref.dtype)


def pallas_matmul_padded(a, b, *, tm, tn, tk, out_dtype=BF16):
    """C = A @ B for pre-padded operands (shapes already multiples of the tiles)."""
    Mp, Kp = a.shape
    Kp2, Np = b.shape
    assert Kp == Kp2 and Mp % tm == 0 and Np % tn == 0 and Kp % tk == 0
    return pl.pallas_call(
        _matmul_kernel,
        out_shape=jax.ShapeDtypeStruct((Mp, Np), out_dtype),
        grid_spec=pltpu.PrefetchScalarGridSpec(
            num_scalar_prefetch=0,
            grid=(Mp // tm, Np // tn, Kp // tk),
            in_specs=[
                pl.BlockSpec((tm, tk), lambda i, j, k: (i, k)),
                pl.BlockSpec((tk, tn), lambda i, j, k: (k, j)),
            ],
            out_specs=pl.BlockSpec((tm, tn), lambda i, j, k: (i, j)),
            scratch_shapes=[pltpu.VMEM((tm, tn), F32)],
        ),
        compiler_params=pltpu.CompilerParams(
            dimension_semantics=("parallel", "parallel", "arbitrary"),
            vmem_limit_bytes=VMEM_LIMIT,
        ),
    )(a, b)


# --------------------------------------------------------------------------
# RGAT edge attention scores: lane-dense (1, E) output, no per-edge MXU matmul.
# score_e = h_e . WhR[etype_e] + t_e . WtR[etype_e] + b . rel_e   (precomputed tables)
# --------------------------------------------------------------------------
def _edge_score_kernel(h_ref, t_ref, whr_ref, wtr_ref, b_ref, o_ref):
    s = jnp.sum(h_ref[...].astype(F32) * whr_ref[...].astype(F32), axis=0, keepdims=True)
    s = s + jnp.sum(t_ref[...].astype(F32) * wtr_ref[...].astype(F32), axis=0, keepdims=True)
    s = s + b_ref[...]
    o_ref[...] = jnp.where(s > 0.0, s, 0.2 * s)            # LeakyReLU(0.2)


def pallas_edge_scores(h_T, t_T, whr_T, wtr_T, brel_row, *, te):
    D, E_pad = h_T.shape
    return pl.pallas_call(
        _edge_score_kernel,
        out_shape=jax.ShapeDtypeStruct((1, E_pad), F32),
        grid_spec=pltpu.PrefetchScalarGridSpec(
            num_scalar_prefetch=0,
            grid=(E_pad // te,),
            in_specs=[pl.BlockSpec((D, te), lambda k: (0, k))] * 4
            + [pl.BlockSpec((1, te), lambda k: (0, k))],
            out_specs=pl.BlockSpec((1, te), lambda k: (0, k)),
        ),
        compiler_params=pltpu.CompilerParams(
            dimension_semantics=("parallel",),
            vmem_limit_bytes=VMEM_LIMIT,
        ),
    )(h_T, t_T, whr_T, wtr_T, brel_row)


# --------------------------------------------------------------------------
# CSR segment softmax + weighted scatter-sum + residual + L2 normalize.
# Edges sorted by head; scalar-prefetched schedule (first tile / last tile / #tiles per
# node block) drives data-dependent edge-tile index maps, so edge data is streamed O(E).
# --------------------------------------------------------------------------
def _rgat_agg_kernel(sched_ref, e_ref, head_ref, t_ref, ent_ref, o_ref,
                     m_sc, l_sc, acc_sc, *, tn_nodes):
    i = pl.program_id(0)
    k = pl.program_id(1)

    @pl.when(k == 0)
    def _():
        m_sc[...] = jnp.full_like(m_sc, -1e30)
        l_sc[...] = jnp.zeros_like(l_sc)
        acc_sc[...] = jnp.zeros_like(acc_sc)

    @pl.when(k < sched_ref[2, i])
    def _():
        node_ids = i * tn_nodes + lax.broadcasted_iota(jnp.int32, (tn_nodes, 1), 0)
        mask = head_ref[...] == node_ids                       # (tn, te)
        e = e_ref[...]                                         # (1, te) lane-dense
        tile_max = jnp.max(e, axis=-1, keepdims=True)          # (1, 1)
        m_new = jnp.maximum(m_sc[...], tile_max)               # (tn, 1)
        alpha = jnp.exp(m_sc[...] - m_new)                     # (tn, 1)   EUP: tn
        rescale = jnp.exp(tile_max - m_new)                    # (tn, 1)   EUP: tn
        exp_e = jnp.exp(e - tile_max)                          # (1, te)   EUP: te
        p = jnp.where(mask, exp_e, 0.0) * rescale              # (tn, te)  VPU only
        l_sc[...] = alpha * l_sc[...] + jnp.sum(p, axis=-1, keepdims=True)
        acc_sc[...] = alpha * acc_sc[...] + jnp.dot(
            p.astype(BF16), t_ref[...], preferred_element_type=jnp.float32)
        m_sc[...] = m_new

    @pl.when(k == pl.num_programs(1) - 1)
    def _():
        agg = acc_sc[...] / jnp.maximum(l_sc[...], 1e-12) + ent_ref[...]
        nrm = jnp.sqrt(jnp.sum(agg * agg, axis=-1, keepdims=True))
        o_ref[...] = agg / jnp.maximum(nrm, 1e-12)             # F.normalize(p=2, eps=1e-12)


def pallas_rgat_aggregate(sched, e_row, head_row, t_sorted, ent_pad, *, tn, te):
    N_pad, D = ent_pad.shape
    E_pad = e_row.shape[1]
    nb = N_pad // tn

    def e_idx(i, k, sched):   # data-dependent edge-tile index, clamped to the block's range
        return (0, jnp.minimum(sched[0, i] + k, sched[1, i]))

    def t_idx(i, k, sched):
        return (jnp.minimum(sched[0, i] + k, sched[1, i]), 0)

    def n_idx(i, k, sched):
        return (i, 0)

    return pl.pallas_call(
        functools.partial(_rgat_agg_kernel, tn_nodes=tn),
        out_shape=jax.ShapeDtypeStruct((N_pad, D), F32),
        grid_spec=pltpu.PrefetchScalarGridSpec(
            num_scalar_prefetch=1,
            grid=(nb, E_pad // te),
            in_specs=[
                pl.BlockSpec((1, te), e_idx),      # edge scores (lane-dense)
                pl.BlockSpec((1, te), e_idx),      # head ids (lane-dense)
                pl.BlockSpec((te, D), t_idx),      # tail embeddings (bf16, sorted)
                pl.BlockSpec((tn, D), n_idx),      # residual entity block
            ],
            out_specs=pl.BlockSpec((tn, D), n_idx),
            scratch_shapes=[
                pltpu.VMEM((tn, 1), F32),          # running max
                pltpu.VMEM((tn, 1), F32),          # running denom
                pltpu.VMEM((tn, D), F32),          # running weighted sum
            ],
        ),
        compiler_params=pltpu.CompilerParams(
            dimension_semantics=("parallel", "arbitrary"),
            vmem_limit_bytes=VMEM_LIMIT,
        ),
    )(sched, e_row, head_row, t_sorted, ent_pad)


def _prep_kg(head, tail, etype, relation_emb, w_h, w_t, fc_b, n_ent):
    """Hop-invariant RGAT prep: edge sort, CSR tile schedule, relation projections."""
    E = head.shape[0]
    te_a = 128                                           # agg edge tile (vreg pressure)
    E_pad = _round_up(E, 512) if E >= 512 else _round_up(E, te_a)
    te_s = min(512, E_pad)                               # score edge tile (E_pad % te_s == 0)
    tn = 128 if n_ent >= 128 else _round_up(n_ent, 8)
    N_pad = _round_up(n_ent, tn)
    nb = N_pad // tn
    n_tiles = E_pad // te_a
    pad = E_pad - E

    order = jnp.argsort(head)
    head_s = head[order].astype(jnp.int32)
    tail_s = tail[order].astype(jnp.int32)
    etype_s = etype[order].astype(jnp.int32)
    head_pad = jnp.concatenate(
        [head_s, jnp.full((pad,), N_pad, jnp.int32)])    # sentinel: never matches a node id

    # Per-node-block edge-tile schedule.
    bounds = jnp.searchsorted(head_pad, jnp.arange(nb + 1, dtype=jnp.int32) * tn)
    seg_start, seg_end = bounds[:-1], bounds[1:]
    t_start = jnp.minimum(seg_start // te_a, n_tiles - 1)
    t_end = jnp.clip((seg_end + te_a - 1) // te_a, 0, n_tiles)
    cnt = jnp.where(seg_end > seg_start, t_end - t_start, 0)
    t_last = t_start + jnp.maximum(cnt - 1, 0)
    sched = jnp.stack([t_start, t_last, cnt]).astype(jnp.int32)    # (3, nb)

    # Relation projections (hoisted: independent of entity embeddings / hop).
    whr = relation_emb @ w_h.T                           # (R, D)
    wtr = relation_emb @ w_t.T                           # (R, D)
    brel = relation_emb @ fc_b                           # (R,)
    whr_T = jnp.pad(whr[etype_s].astype(BF16).T, ((0, 0), (0, pad)))
    wtr_T = jnp.pad(wtr[etype_s].astype(BF16).T, ((0, 0), (0, pad)))
    brel_row = jnp.pad(brel[etype_s].astype(F32), (0, pad)).reshape(1, E_pad)
    head_row = head_pad.reshape(1, E_pad)

    return dict(pad=pad, te_a=te_a, te_s=te_s, tn=tn, N_pad=N_pad,
                head_idx=head_s, tail_idx=tail_s, head_row=head_row, sched=sched,
                whr_T=whr_T, wtr_T=wtr_T, brel_row=brel_row)


def _rgat_hop(entity_emb, prep):
    N, D = entity_emb.shape
    pad = prep["pad"]
    ent_bf = entity_emb.astype(BF16)                     # cast once; gathers stream bf16
    h_g = ent_bf[prep["head_idx"]]                       # (E, D)
    t_g = ent_bf[prep["tail_idx"]]                       # (E, D)
    h_T = jnp.pad(h_g.T, ((0, 0), (0, pad)))             # (D, E_pad) for lane-dense scores
    t_T = jnp.pad(t_g.T, ((0, 0), (0, pad)))
    t_s = jnp.pad(t_g, ((0, pad), (0, 0)))               # (E_pad, D) for the agg matmul

    e_row = pallas_edge_scores(h_T, t_T, prep["whr_T"], prep["wtr_T"],
                               prep["brel_row"], te=prep["te_s"])       # (1, E_pad)
    ent_pad = jnp.pad(entity_emb.astype(F32), ((0, prep["N_pad"] - N), (0, 0)))
    out = pallas_rgat_aggregate(prep["sched"], e_row, prep["head_row"], t_s, ent_pad,
                                tn=prep["tn"], te=prep["te_a"])
    return out[:N]


def rgat_forward(entity_emb, relation_emb, kg, w_h, w_t, fc_b, n_hops):
    # Matches torch RGAT.forward: returns the last hop's normalized embedding.
    # TODO(synk): mess_dropout (training-mode dropout inside the hop) is not applied.
    head, tail, etype = kg
    prep = _prep_kg(head, tail, etype, relation_emb, w_h, w_t, fc_b,
                    n_ent=entity_emb.shape[0])
    for _ in range(n_hops):
        entity_emb = _rgat_hop(entity_emb, prep)
    return entity_emb


# --------------------------------------------------------------------------
# Loss kernels
# --------------------------------------------------------------------------
def _bpr_kernel(u_ref, p_ref, n_ref, rec_ref, reg_ref):
    u, p, n = u_ref[...], p_ref[...], n_ref[...]
    B = float(u.shape[0])
    reg_ref[...] = 0.5 * (
        jnp.sum(u * u, keepdims=True)
        + jnp.sum(p * p, keepdims=True)
        + jnp.sum(n * n, keepdims=True)
    ) / B
    pos = jnp.sum(u * p, axis=-1, keepdims=True)
    neg = jnp.sum(u * n, axis=-1, keepdims=True)
    rec_ref[...] = jnp.sum(_softplus(-(pos - neg)), keepdims=True)


def pallas_bpr_loss(u_e, pos_e, neg_e):
    rec, reg = pl.pallas_call(
        _bpr_kernel,
        out_shape=(jax.ShapeDtypeStruct((1, 1), F32), jax.ShapeDtypeStruct((1, 1), F32)),
        in_specs=[WHOLE_VMEM] * 3,
        out_specs=(WHOLE_VMEM, WHOLE_VMEM),
        compiler_params=pltpu.CompilerParams(vmem_limit_bytes=VMEM_LIMIT),
    )(u_e.astype(F32), pos_e.astype(F32), neg_e.astype(F32))
    return rec[0, 0], reg[0, 0]


def _infonce_kernel(z1_ref, z2_ref, za_ref, o_ref, m_sc, l_sc, *, tau, n_all, ta, tb, batch):
    i = pl.program_id(0)
    k = pl.program_id(1)

    @pl.when(k == 0)
    def _():
        m_sc[...] = jnp.full_like(m_sc, -1e30)
        l_sc[...] = jnp.zeros_like(l_sc)

    # Inputs are pre-normalized; z_all streams in bf16 (the only N_all-scaling traffic).
    s = lax.dot_general(z1_ref[...].astype(BF16), za_ref[...], (((1,), (1,)), ((), ())),
                        preferred_element_type=jnp.float32) * (1.0 / tau)   # (tb, ta)
    col_valid = (k * ta + lax.broadcasted_iota(jnp.int32, (1, ta), 1)) < n_all
    s = jnp.where(col_valid, s, -1e30)
    m_new = jnp.maximum(m_sc[...], jnp.max(s, axis=-1, keepdims=True))
    p = jnp.where(col_valid, jnp.exp(s - m_new), 0.0)
    l_sc[...] = jnp.exp(m_sc[...] - m_new) * l_sc[...] + jnp.sum(p, axis=-1, keepdims=True)
    m_sc[...] = m_new

    @pl.when(k == pl.num_programs(1) - 1)
    def _():
        cos = jnp.sum(z1_ref[...] * z2_ref[...], axis=-1, keepdims=True)
        lse = m_sc[...] + jnp.log(jnp.maximum(l_sc[...], 1e-30))
        row_valid = (i * tb + lax.broadcasted_iota(jnp.int32, (tb, 1), 0)) < batch
        # per-row: -log( exp(cos/tau) / sum_j exp(sim_j/tau) )
        o_ref[...] = jnp.where(row_valid, lse - cos * (1.0 / tau), 0.0)


def pallas_infonce(z1, z2, z_all, tau):
    B, D = z1.shape
    n_all = z_all.shape[0]

    def _norm(x):
        n = jnp.sqrt(jnp.sum(x * x, axis=-1, keepdims=True))
        return x / jnp.maximum(n, 1e-12)

    z1n = _norm(z1.astype(F32))
    z2n = _norm(z2.astype(F32))
    zan = _norm(z_all.astype(F32)).astype(BF16)

    tb = min(128, _round_up(B, 8))          # "parallel" row axis -> both v7x TCs get work
    B_pad = _round_up(B, tb)
    ta = min(512, _round_up(n_all, 16))
    N_pad = _round_up(n_all, ta)

    z1p = jnp.pad(z1n, ((0, B_pad - B), (0, 0)))
    z2p = jnp.pad(z2n, ((0, B_pad - B), (0, 0)))
    zap = jnp.pad(zan, ((0, N_pad - n_all), (0, 0)))

    out = pl.pallas_call(
        functools.partial(_infonce_kernel, tau=float(tau), n_all=n_all, ta=ta, tb=tb, batch=B),
        out_shape=jax.ShapeDtypeStruct((B_pad, 1), F32),
        grid_spec=pltpu.PrefetchScalarGridSpec(
            num_scalar_prefetch=0,
            grid=(B_pad // tb, N_pad // ta),
            in_specs=[
                pl.BlockSpec((tb, D), lambda i, k: (i, 0)),
                pl.BlockSpec((tb, D), lambda i, k: (i, 0)),
                pl.BlockSpec((ta, D), lambda i, k: (k, 0)),
            ],
            out_specs=pl.BlockSpec((tb, 1), lambda i, k: (i, 0)),
            scratch_shapes=[pltpu.VMEM((tb, 1), F32), pltpu.VMEM((tb, 1), F32)],
        ),
        compiler_params=pltpu.CompilerParams(
            dimension_semantics=("parallel", "arbitrary"),
            vmem_limit_bytes=VMEM_LIMIT,
        ),
    )(z1p, z2p, zap)
    return jnp.sum(out)


def _rowwise_cos_kernel(a_ref, b_ref, o_ref):
    a, b = a_ref[...], b_ref[...]
    na = jnp.sum(a * a, axis=0, keepdims=True)
    nb = jnp.sum(b * b, axis=0, keepdims=True)
    ab = jnp.sum(a * b, axis=0, keepdims=True)
    o_ref[...] = ab / jnp.maximum(jnp.sqrt(na * nb), 1e-8)


def pallas_rowwise_cosine(a, b):
    # Transposed inputs -> lane-dense (1, N) output (avoids masked (N, 1) stores).
    N, D = a.shape
    tr = min(512, _round_up(N, 128))
    N_pad = _round_up(N, tr)
    a_T = jnp.pad(a.astype(F32).T, ((0, 0), (0, N_pad - N)))
    b_T = jnp.pad(b.astype(F32).T, ((0, 0), (0, N_pad - N)))
    out = pl.pallas_call(
        _rowwise_cos_kernel,
        out_shape=jax.ShapeDtypeStruct((1, N_pad), F32),
        grid_spec=pltpu.PrefetchScalarGridSpec(
            num_scalar_prefetch=0,
            grid=(N_pad // tr,),
            in_specs=[pl.BlockSpec((D, tr), lambda k: (0, k)),
                      pl.BlockSpec((D, tr), lambda k: (0, k))],
            out_specs=pl.BlockSpec((1, tr), lambda k: (0, k)),
        ),
        compiler_params=pltpu.CompilerParams(
            dimension_semantics=("parallel",),
            vmem_limit_bytes=VMEM_LIMIT,
        ),
    )(a_T, b_T)
    return out[0, :N]


# --------------------------------------------------------------------------
# Model glue (adjacency construction, sampling, aug views) — XLA side
# --------------------------------------------------------------------------
def make_binorm_adj_dense(ui_dense):
    # TODO(synk): keep the bi-normalized adjacency sparse (CSR) + Pallas SpMM at real scale.
    n_u, n_i = ui_dense.shape
    top = jnp.concatenate([jnp.zeros((n_u, n_u), F32), ui_dense], axis=1)
    bot = jnp.concatenate([ui_dense.T, jnp.zeros((n_i, n_i), F32)], axis=1)
    A = (jnp.concatenate([top, bot], axis=0) != 0).astype(F32)
    deg = jnp.sum(A, axis=-1)
    d_inv_sqrt = jnp.where(deg > 0, 1.0 / jnp.sqrt(deg), 0.0)
    return (A * d_inv_sqrt[None, :]).T * d_inv_sqrt[None, :]


def sparse_dropout_dense(key, adj, rate):
    keep = jax.random.bernoulli(key, rate, adj.shape).astype(F32)
    return adj * keep * (1.0 / (1.0 - rate))


def edge_sampling(key, head, tail, etype, rate):
    n = head.shape[0]
    k = int(n * rate)
    idx = jax.random.permutation(key, n)[:k]
    return head[idx], tail[idx], etype[idx]


def gcn(params, cfg, kg, g_dense):
    n_users, n_items = cfg["n_users"], cfg["n_items"]
    user_emb = params["all_embed"][:n_users]
    entity_emb = params["all_embed"][n_users:]
    entity_emb = rgat_forward(
        entity_emb, params["relation_embed"], kg,
        params["w_head"], params["w_tail"], params["fc_b"], cfg["context_hops"],
    )[:n_items]
    cur = jnp.concatenate([user_emb, entity_emb], axis=0)
    M, D = cur.shape

    # Hoist adjacency / feature padding and bf16 cast out of the hop loop.
    t_mk = 512 if M >= 512 else _round_up(M, 128)     # square tiles so hop output feeds hop input
    Mp = _round_up(M, t_mk)
    Np = _round_up(D, 128)
    tn = min(256, Np)
    g_pad = jnp.pad(g_dense.astype(F32), ((0, Mp - M), (0, Mp - M))).astype(BF16)
    cur_p = jnp.pad(cur, ((0, Mp - M), (0, Np - D))).astype(BF16)
    total = jnp.pad(cur, ((0, Mp - M), (0, Np - D)))            # f32 running sum
    for _ in range(cfg["context_hops"]):
        cur_p = pallas_matmul_padded(g_pad, cur_p, tm=t_mk, tn=tn, tk=t_mk)   # bf16 MXU hop
        total = total + cur_p.astype(F32)
    total = total[:M, :D]
    return total[:n_users], total[n_users:]


def get_ui_aug_views(key, stability, mu, ui_row, ui_col, ui_val, n_users, n_items):
    ks = jnp.exp(stability)
    kw = (ks - jnp.min(ks)) / jnp.maximum(jnp.max(ks) - jnp.min(ks), 1e-12)
    kw = jnp.where(kw > 0.3, kw, 0.3)
    w = mu / jnp.mean(kw) * kw
    w = jnp.where(w < 0.95, w, 0.95)
    edge_w = w[ui_col]
    mask = jax.random.bernoulli(key, edge_w)
    masked_val = jnp.where(mask, ui_val, 0.0)
    ui_dense = jnp.zeros((n_users, n_items), F32).at[ui_row, ui_col].add(masked_val)
    return make_binorm_adj_dense(ui_dense)


def get_aug_views(params, cfg, rng):
    k1, k2, k3, k4 = jax.random.split(rng, 4)
    entity_emb = params["all_embed"][cfg["n_users"]:]
    kg1 = edge_sampling(k1, cfg["kg_head"], cfg["kg_tail"], cfg["kg_type"],
                        cfg["node_dropout_rate"])
    kg2 = edge_sampling(k2, cfg["kg_head"], cfg["kg_tail"], cfg["kg_type"],
                        cfg["node_dropout_rate"])
    v1 = rgat_forward(entity_emb, params["relation_embed"], kg1, params["w_head"],
                      params["w_tail"], params["fc_b"], cfg["context_hops"])[: cfg["n_items"]]
    v2 = rgat_forward(entity_emb, params["relation_embed"], kg2, params["w_head"],
                      params["w_tail"], params["fc_b"], cfg["context_hops"])[: cfg["n_items"]]
    # TODO(synk): only the cosine sim_metric branch is implemented (no wasserstein_1d).
    stability = pallas_rowwise_cosine(v1, v2)
    ui1 = get_ui_aug_views(k3, stability, cfg["mu"], cfg["ui_row"], cfg["ui_col"],
                           cfg["ui_val"], cfg["n_users"], cfg["n_items"])
    ui2 = get_ui_aug_views(k4, stability, cfg["mu"], cfg["ui_row"], cfg["ui_col"],
                           cfg["ui_val"], cfg["n_users"], cfg["n_items"])
    return kg1, kg2, ui1, ui2


def kgcl_forward(params, cfg, batch, rng):
    users, pos, neg = batch["users"], batch["pos_items"], batch["neg_items"]
    k_aug, k_adj, k_kg = jax.random.split(rng, 3)

    kg_v1, kg_v2, ui_v1, ui_v2 = get_aug_views(params, cfg, k_aug)

    if cfg["node_dropout"]:
        g = sparse_dropout_dense(k_adj, cfg["binorm_adj"], cfg["node_dropout_rate"])
        kg_main = edge_sampling(k_kg, cfg["kg_head"], cfg["kg_tail"], cfg["kg_type"],
                                cfg["node_dropout_rate"])
    else:
        g = cfg["binorm_adj"]
        kg_main = (cfg["kg_head"], cfg["kg_tail"], cfg["kg_type"])

    user_emb, item_emb = gcn(params, cfg, kg_main, g)
    u_e, pos_e, neg_e = user_emb[users], item_emb[pos], item_emb[neg]
    rec_loss, reg_loss = pallas_bpr_loss(u_e, pos_e, neg_e)

    u1, i1 = gcn(params, cfg, kg_v1, ui_v1)
    u2, i2 = gcn(params, cfg, kg_v2, ui_v2)
    user_cl = pallas_infonce(u1[users], u2[users], u2, cfg["tau"])
    item_cl = pallas_infonce(i1[pos], i2[pos], i2, cfg["tau"])
    cl_loss = cfg["cl_weight"] * (user_cl + item_cl)

    loss = rec_loss + cfg["l2"] * reg_loss
    return loss, {"rec_loss": rec_loss, "cl_loss": cl_loss}


# --------------------------------------------------------------------------
# Deterministic example construction
# --------------------------------------------------------------------------
def xavier_uniform(key, shape, gain=1.0):
    fan_in, fan_out = shape[-2], shape[-1]
    bound = gain * jnp.sqrt(6.0 / (fan_in + fan_out))
    return jax.random.uniform(key, shape, F32, -bound, bound)


if __name__ == "__main__":
    n_users, n_items, n_entities, n_relations = 8, 8, 12, 4
    dim = 32
    n_kg_edges = 24
    B = 6   # batch != n_users/n_items so InfoNCE takes the normalized-mm branch

    cfg = dict(
        n_users=n_users, n_items=n_items, n_entities=n_entities,
        n_relations=n_relations, dim=dim, context_hops=2,
        node_dropout=True, node_dropout_rate=0.5,
        tau=0.2, cl_weight=0.1, mu=0.5, l2=1e-4,
    )

    root = jax.random.PRNGKey(0)
    keys = jax.random.split(root, 16)

    cfg["kg_head"] = jax.random.randint(keys[0], (n_kg_edges,), 0, n_entities)
    cfg["kg_tail"] = jax.random.randint(keys[1], (n_kg_edges,), 0, n_entities)
    cfg["kg_type"] = jax.random.randint(keys[2], (n_kg_edges,), 0, n_relations)

    cols = []
    for u in range(n_users):
        perm = jax.random.permutation(jax.random.fold_in(keys[3], u), n_items)[:3]
        cols.append(perm)
    ui_col = jnp.concatenate(cols).astype(jnp.int32)
    ui_row = jnp.repeat(jnp.arange(n_users, dtype=jnp.int32), 3)
    ui_val = jnp.ones((ui_row.shape[0],), F32)
    cfg["ui_row"], cfg["ui_col"], cfg["ui_val"] = ui_row, ui_col, ui_val
    ui_dense = jnp.zeros((n_users, n_items), F32).at[ui_row, ui_col].set(1.0)
    cfg["binorm_adj"] = make_binorm_adj_dense(ui_dense)

    n_nodes = n_users + n_entities
    fc_w_full = xavier_uniform(keys[4], (2 * dim, dim))   # Linear(2*dim, dim) weight^T
    params = dict(
        all_embed=xavier_uniform(keys[5], (n_nodes, dim)),
        relation_embed=xavier_uniform(keys[6], (n_relations, dim)),
        w_head=fc_w_full[:dim],
        w_tail=fc_w_full[dim:],
        fc_b=jax.random.uniform(keys[7], (dim,), F32, -0.05, 0.05),
    )

    batch = dict(
        users=jax.random.randint(keys[8], (B,), 0, n_users),
        pos_items=jax.random.randint(keys[9], (B,), 0, n_items),
        neg_items=jax.random.randint(keys[10], (B,), 0, n_items),
    )

    loss, metrics = kgcl_forward(params, cfg, batch, jax.random.PRNGKey(42))
    jax.block_until_ready(loss)
    _ = {k: float(v) for k, v in metrics.items()}
    print("KERNEL_OK")
</pallas_src>

<mosaic_0001>
module attributes {stable_mosaic.version = 11 : i64} {
  func.func @_edge_score_kernel(%arg0: i32, %arg1: memref<32x128xbf16, #tpu.memory_space<vmem>>, %arg2: memref<32x128xbf16, #tpu.memory_space<vmem>>, %arg3: memref<32x128xbf16, #tpu.memory_space<vmem>>, %arg4: memref<32x128xbf16, #tpu.memory_space<vmem>>, %arg5: memref<1x128xf32, #tpu.memory_space<vmem>>, %arg6: memref<1x128xf32, #tpu.memory_space<vmem>>) attributes {dimension_semantics = [#tpu.dimension_semantics<parallel>], iteration_bounds = array<i64: 1>, scalar_prefetch = 0 : i64, scratch_operands = 0 : i64, tpu.core_type = #tpu.core_type<tc>, window_params = [{transform_indices = @transform_0, window_bounds = array<i64: 32, 128>}, {transform_indices = @transform_1, window_bounds = array<i64: 32, 128>}, {transform_indices = @transform_2, window_bounds = array<i64: 32, 128>}, {transform_indices = @transform_3, window_bounds = array<i64: 32, 128>}, {transform_indices = @transform_4, window_bounds = array<i64: 1, 128>}, {transform_indices = @transform_5, window_bounds = array<i64: 1, 128>}]} {
    %c0 = arith.constant 0 : index
    %c0_0 = arith.constant 0 : index
    %0 = vector.load %arg1[%c0, %c0_0] : memref<32x128xbf16, #tpu.memory_space<vmem>>, vector<32x128xbf16>
    %1 = arith.extf %0 : vector<32x128xbf16> to vector<32x128xf32>
    %c0_1 = arith.constant 0 : index
    %c0_2 = arith.constant 0 : index
    %2 = vector.load %arg3[%c0_1, %c0_2] : memref<32x128xbf16, #tpu.memory_space<vmem>>, vector<32x128xbf16>
    %3 = arith.extf %2 : vector<32x128xbf16> to vector<32x128xf32>
    %4 = arith.mulf %1, %3 : vector<32x128xf32>
    %cst = arith.constant dense<0.000000e+00> : vector<128xf32>
    %5 = vector.multi_reduction <add>, %4, %cst [0] : vector<32x128xf32> to vector<128xf32>
    %6 = vector.shape_cast %5 : vector<128xf32> to vector<1x128xf32>
    %c0_3 = arith.constant 0 : index
    %c0_4 = arith.constant 0 : index
    %7 = vector.load %arg2[%c0_3, %c0_4] : memref<32x128xbf16, #tpu.memory_space<vmem>>, vector<32x128xbf16>
    %8 = arith.extf %7 : vector<32x128xbf16> to vector<32x128xf32>
    %c0_5 = arith.constant 0 : index
    %c0_6 = arith.constant 0 : index
    %9 = vector.load %arg4[%c0_5, %c0_6] : memref<32x128xbf16, #tpu.memory_space<vmem>>, vector<32x128xbf16>
    %10 = arith.extf %9 : vector<32x128xbf16> to vector<32x128xf32>
    %11 = arith.mulf %8, %10 : vector<32x128xf32>
    %cst_7 = arith.constant dense<0.000000e+00> : vector<128xf32>
    %12 = vector.multi_reduction <add>, %11, %cst_7 [0] : vector<32x128xf32> to vector<128xf32>
    %13 = vector.shape_cast %12 : vector<128xf32> to vector<1x128xf32>
    %14 = arith.addf %6, %13 : vector<1x128xf32>
    %c0_8 = arith.constant 0 : index
    %c0_9 = arith.constant 0 : index
    %15 = vector.load %arg5[%c0_8, %c0_9] : memref<1x128xf32, #tpu.memory_space<vmem>>, vector<1x128xf32>
    %16 = arith.addf %14, %15 : vector<1x128xf32>
    %cst_10 = arith.constant 0.000000e+00 : f32
    %17 = vector.broadcast %cst_10 : f32 to vector<1x128xf32>
    %18 = arith.cmpf ogt, %16, %17 : vector<1x128xf32>
    %cst_11 = arith.constant 2.000000e-01 : f32
    %19 = vector.broadcast %cst_11 : f32 to vector<1x128xf32>
    %20 = arith.mulf %19, %16 : vector<1x128xf32>
    %21 = arith.select %18, %16, %20 : vector<1x128xi1>, vector<1x128xf32>
    %c0_12 = arith.constant 0 : index
    %c0_13 = arith.constant 0 : index
    %22 = vector.load %arg6[%c0_12, %c0_13] : memref<1x128xf32, #tpu.memory_space<vmem>>, vector<1x128xf32>
    tpu.vector_store %arg6[%c0_12, %c0_13], %21 {strides = array<i32>} : memref<1x128xf32, #tpu.memory_space<vmem>>, vector<1x128xf32>,
    return
  }
  func.func @transform_0(%arg0: i32) -> (i32, i32) {
    %c0_i32 = arith.constant 0 : i32
    %c0_i32_0 = arith.constant 0 : i32
    return %c0_i32, %arg0 : i32, i32
  }
  func.func @transform_1(%arg0: i32) -> (i32, i32) {
    %c0_i32 = arith.constant 0 : i32
    %c0_i32_0 = arith.constant 0 : i32
    return %c0_i32, %arg0 : i32, i32
  }
  func.func @transform_2(%arg0: i32) -> (i32, i32) {
    %c0_i32 = arith.constant 0 : i32
    %c0_i32_0 = arith.constant 0 : i32
    return %c0_i32, %arg0 : i32, i32
  }
  func.func @transform_3(%arg0: i32) -> (i32, i32) {
    %c0_i32 = arith.constant 0 : i32
    %c0_i32_0 = arith.constant 0 : i32
    return %c0_i32, %arg0 : i32, i32
  }
  func.func @transform_4(%arg0: i32) -> (i32, i32) {
    %c0_i32 = arith.constant 0 : i32
    %c0_i32_0 = arith.constant 0 : i32
    return %c0_i32, %arg0 : i32, i32
  }
  func.func @transform_5(%arg0: i32) -> (i32, i32) {
    %c0_i32 = arith.constant 0 : i32
    %c0_i32_0 = arith.constant 0 : i32
    return %c0_i32, %arg0 : i32, i32
  }
}

</mosaic_0001>

<bundles_post_ra>
// kernel: tpu_custom_call.1
= control target key start
LH: loop header
LB: loop body
LE: loop exit
PB: predicated region body
PF: predicated region fallthrough
CT: control target
= control target key end

     0   :  { %10 = vsyncpa [#allocation3], 0  ;;  %s445_s0 = inlined_call_operand.hbm [shape: bf16[32,128], index: 0, kind: input, shape index: {}]   ;;  %s446_s1 = inlined_call_operand.hbm [shape: bf16[32,128], index: 1, kind: input, shape index: {}]   ;;  %s447_s2 = inlined_call_operand.hbm [shape: bf16[32,128], index: 2, kind: input, shape index: {}]   ;;  %s448_s3 = inlined_call_operand.hbm [shape: bf16[32,128], index: 3, kind: input, shape index: {}]   ;;  %s449_s4 = inlined_call_operand.vmem [shape: f32[1,128], index: 4, kind: input, shape index: {}]   ;;  %s450_s5 = inlined_call_operand.hbm [shape: f32[1,128], index: 5, kind: output, shape index: {}]  }
   0x1   :  { %11 = vsyncpa [#allocation6], 0 }
   0x2   :  { %12 = vsyncpa [#allocation9], 0 }
   0x3   :  { %13 = vsyncpa [#allocation4], 0  ;;  %s319_s18 = smov [#allocation5]   ;;  %s320_s20 = smov [#allocation2]  }
   0x4   :  { %s31_s19 = sshll.u32 %s319_s18, 4  ;;  %s19_s21 = sshll.u32 %s320_s20, 4  ;;  %s32_s19 = int_to_ptr.vmem [resolvable:$true] %s31_s19  ;;  %s356_s21 = int_to_ptr.vmem [resolvable:$true] %s19_s21 }
   0x5   :  { %s201_s24 = scalar_lea.hbm %s446_s1, 256 }
   0x6   :  { %p202_p0 = scmp.ne.s32.totalorder %s446_s1, %s201_s24  ;;  %p205_p1 = scmp.lt.u32.totalorder %s201_s24, %s446_s1 }
   0x8   :  { %p207_p2 = pnand %p205_p1, %p202_p0 }
   0xa   :  { %210 = shalt.err (!%p207_p2)
}
   0xb   :  { %s211_s29 = scalar_lea.vmem %s32_s19, 256  ;;  %p216_p4 = scmp.lt.s32.totalorder %s32_s19, %s32_s19 }
   0xc   :  { %p212_p3 = scmp.ne.s32.totalorder %s32_s19, %s211_s29  ;;  %p217_p5 = scmp.lt.s32.totalorder %s211_s29, %s211_s29 }
   0xe   :  { %p218_p6 = por %p217_p5, %p216_p4 }
  0x10   :  { %p219_p7 = pnand %p218_p6, %p212_p3 }
  0x12   :  { %222 = shalt.err (!%p219_p7)
}
  0x13   :  { %s321_s30 = smov 64   ;;  %s322_s6 = smov 4  }
  0x14   :  { %37 = dma.hbm_to_vmem [thread:$0]  %s446_s1, 256, %s32_s19, [#allocation6], %s321_s30, %s321_s30, %s322_s6  }
  0x15   :  { %s223_s11 = scalar_lea.hbm %s445_s0, 256 }
  0x16   :  { %p224_p8 = scmp.ne.s32.totalorder %s445_s0, %s223_s11  ;;  %p227_p9 = scmp.lt.u32.totalorder %s223_s11, %s445_s0 }
  0x18   :  { %p229_p10 = pnand %p227_p9, %p224_p8 }
  0x1a   :  { %232 = shalt.err (!%p229_p10)
}
  0x1b   :  { %s233_s16 = scalar_lea.vmem %s356_s21, 256  ;;  %p238_p12 = scmp.lt.s32.totalorder %s356_s21, %s356_s21 }
  0x1c   :  { %p234_p11 = scmp.ne.s32.totalorder %s356_s21, %s233_s16  ;;  %p239_p13 = scmp.lt.s32.totalorder %s233_s16, %s233_s16 }
  0x1e   :  { %p240_p0 = por %p239_p13, %p238_p12 }
  0x20   :  { %p241_p1 = pnand %p240_p0, %p234_p11 }
  0x22   :  { %244 = shalt.err (!%p241_p1)
}
  0x23   :  { %25 = dma.hbm_to_vmem [thread:$0]  %s445_s0, 256, %s356_s21, [#allocation3], %s321_s30, %s321_s30, %s322_s6  }
  0x24   :  { %s323_s18 = smov [#allocation7]   ;;  %s324_s20 = smov [#allocation8]  }
  0x25   :  { %s43_s19 = sshll.u32 %s323_s18, 4  ;;  %s55_s22 = sshll.u32 %s324_s20, 4  ;;  %s44_s19 = int_to_ptr.vmem [resolvable:$true] %s43_s19  ;;  %s393_s22 = int_to_ptr.vmem [resolvable:$true] %s55_s22 }
  0x26   :  { %s245_s25 = scalar_lea.hbm %s447_s2, 256 }
  0x27   :  { %p246_p2 = scmp.ne.s32.totalorder %s447_s2, %s245_s25  ;;  %p249_p3 = scmp.lt.u32.totalorder %s245_s25, %s447_s2 }
  0x29   :  { %p251_p4 = pnand %p249_p3, %p246_p2 }
  0x2b   :  { %254 = shalt.err (!%p251_p4)
}
  0x2c   :  { %s255_s0 = scalar_lea.vmem %s44_s19, 256  ;;  %p260_p6 = scmp.lt.s32.totalorder %s44_s19, %s44_s19 }
  0x2d   :  { %p256_p5 = scmp.ne.s32.totalorder %s44_s19, %s255_s0  ;;  %p261_p7 = scmp.lt.s32.totalorder %s255_s0, %s255_s0 }
  0x2f   :  { %p262_p8 = por %p261_p7, %p260_p6 }
  0x31   :  { %p263_p9 = pnand %p262_p8, %p256_p5 }
  0x33   :  { %266 = shalt.err (!%p263_p9)
}
  0x34   :  { %49 = dma.hbm_to_vmem [thread:$0]  %s447_s2, 256, %s44_s19, [#allocation6], %s321_s30, %s321_s30, %s322_s6  }
  0x35   :  { %s267_s10 = scalar_lea.hbm %s448_s3, 256 }
  0x36   :  { %p268_p10 = scmp.ne.s32.totalorder %s448_s3, %s267_s10  ;;  %p271_p11 = scmp.lt.u32.totalorder %s267_s10, %s448_s3 }
  0x38   :  { %p273_p12 = pnand %p271_p11, %p268_p10 }
  0x3a   :  { %276 = shalt.err (!%p273_p12)
}
  0x3b   :  { %s277_s15 = scalar_lea.vmem %s393_s22, 256  ;;  %p282_p0 = scmp.lt.s32.totalorder %s393_s22, %s393_s22 }
  0x3c   :  { %p278_p13 = scmp.ne.s32.totalorder %s393_s22, %s277_s15  ;;  %p283_p1 = scmp.lt.s32.totalorder %s277_s15, %s277_s15 }
  0x3e   :  { %p284_p2 = por %p283_p1, %p282_p0 }
  0x40   :  { %p285_p3 = pnand %p284_p2, %p278_p13 }
  0x42   :  { %288 = shalt.err (!%p285_p3)
}
  0x43   :  { %61 = dma.hbm_to_vmem [thread:$0]  %s448_s3, 256, %s393_s22, [#allocation9], %s321_s30, %s321_s30, %s322_s6  }
  0x44   :  { %311 = dma.done.wait [#allocation3], 256  }
  0x45   :  { %312 = vsyncadd [#allocation3], 4294967040 }
  0x46   :  { %313 = dma.done.wait [#allocation6], 512  }
  0x47   :  { %314 = vsyncadd [#allocation6], 4294966784 }
  0x48   :  { %315 = dma.done.wait [#allocation9], 256  }
  0x49   :  { %316 = vsyncadd [#allocation9], 4294967040  ;;  %v159_v0 = vld [vmem:[#allocation2] sm:$0xff]   ;;  %v190_v1 = vld [vmem:[#allocation2 + $0x8] sm:$0xff]   ;;  %s325_s6 = smov [#allocation10]  }
  0x4a   :  { %v167_v2 = vld [vmem:[#allocation7] sm:$0xff]   ;;  %v160_v3 = vunpack.c.l.bf16 %v159_v0  ;;  %v161_v4 = vunpack.c.h.bf16 %v159_v0  ;;  %v164_v5 = vunpack.c.l.bf16 %v190_v1  ;;  %v165_v6 = vunpack.c.h.bf16 %v190_v1  ;;  %v191_v7 = vld [vmem:[#allocation7 + $0x8] sm:$0xff]   ;;  %v175_v8 = vld [vmem:[#allocation5] sm:$0xff]   ;;  %s147_s1 = sshll.u32 %s325_s6, 4  ;;  %s148_s1 = int_to_ptr.vmem [resolvable:$true] %s147_s1 }
  0x4b   :  { %v192_v9 = vld [vmem:[#allocation5 + $0x8] sm:$0xff]   ;;  %v168_v10 = vunpack.c.l.bf16 %v167_v2  ;;  %v169_v11 = vunpack.c.h.bf16 %v167_v2  ;;  %v172_v12 = vunpack.c.l.bf16 %v191_v7  ;;  %v173_v13 = vunpack.c.h.bf16 %v191_v7  ;;  %v183_v14 = vld [vmem:[#allocation8] sm:$0xff]   ;;  %v135_v50 = vld [vmem:[%s449_s4] sm:$0x1]  ;;  %s289_s17 = scalar_lea.vmem %s148_s1, 16  ;;  %s293_s18 = scalar_lea.vmem %s148_s1, 32 }
  0x4c   :  { %v193_v15 = vld [vmem:[#allocation8 + $0x8] sm:$0xff]   ;;  %v176_v16 = vunpack.c.l.bf16 %v175_v8  ;;  %v177_v17 = vunpack.c.h.bf16 %v175_v8  ;;  %v180_v18 = vunpack.c.l.bf16 %v192_v9  ;;  %v181_v22 = vunpack.c.h.bf16 %v192_v9  ;;  %p290_p4 = scmp.ne.s32.totalorder %s148_s1, %s289_s17  ;;  %p294_p5 = scmp.lt.s32.totalorder %s148_s1, %s148_s1 }
  0x4d   :  { %v92_v19 = vmul.f32 %v168_v10, %v160_v3  ;;  %v93_v20 = vmul.f32 %v169_v11, %v161_v4  ;;  %v94_v21 = vmul.f32 %v172_v12, %v164_v5  ;;  %v184_v23 = vunpack.c.l.bf16 %v183_v14  ;;  %p295_p6 = scmp.lt.s32.totalorder %s293_s18, %s289_s17 }
  0x4e   :  { %v185_v24 = vunpack.c.h.bf16 %v183_v14  ;;  %v188_v25 = vunpack.c.l.bf16 %v193_v15  ;;  %v189_v26 = vunpack.c.h.bf16 %v193_v15  ;;  %v95_v27 = vmul.f32 %v173_v13, %v165_v6 }
  0x4f   :  { %v96_v28 = vadd.f32 %v93_v20, %v92_v19  ;;  %v121_v29 = vmul.f32 %v184_v23, %v176_v16  ;;  %p296_p7 = por %p295_p6, %p294_p5 }
  0x50   :  { %v122_v30 = vmul.f32 %v185_v24, %v177_v17  ;;  %v123_v31 = vmul.f32 %v188_v25, %v180_v18  ;;  %v124_v33 = vmul.f32 %v189_v26, %v181_v22 }
  0x51   :  { %v97_v32 = vadd.f32 %v96_v28, %v94_v21  ;;  %p297_p8 = pnand %p296_p7, %p290_p4 }
  0x52   :  { %v125_v34 = vadd.f32 %v122_v30, %v121_v29 }
  0x53   :  { %v98_v35 = vadd.f32 %v97_v32, %v95_v27 }
  0x54   :  { %v126_v36 = vadd.f32 %v125_v34, %v123_v31 }
  0x55   :  { %v99_v37 = vrot.slane %v98_v35, 4 }
  0x56   :  { %v127_v38 = vadd.f32 %v126_v36, %v124_v33 }
  0x57   :  { %v100_v39 = vadd.f32 %v99_v37, %v98_v35 }
  0x58   :  { %v128_v40 = vrot.slane %v127_v38, 4 }
  0x59   :  { %v101_v41 = vrot.slane %v100_v39, 2 }
  0x5a   :  { %v129_v42 = vadd.f32 %v128_v40, %v127_v38 }
  0x5b   :  { %v102_v43 = vadd.f32 %v101_v41, %v100_v39 }
  0x5c   :  { %v130_v44 = vrot.slane %v129_v42, 2 }
  0x5d   :  { %v103_v45 = vrot.slane %v102_v43, 1 }
  0x5e   :  { %v131_v46 = vadd.f32 %v130_v44, %v129_v42 }
  0x5f   :  { %v104_v47 = vadd.f32 %v103_v45, %v102_v43 }
  0x60   :  { %v132_v48 = vrot.slane %v131_v46, 1 }
  0x62   :  { %v133_v49 = vadd.f32 %v132_v48, %v131_v46 }
  0x64   :  { %v134_v51 = vadd.f32 %v133_v49, %v104_v47 }
  0x66   :  { %v136_v52 = vadd.f32 %v135_v50, %v134_v51 }
  0x68   :  { %vm137_vm0 = vcmp.gt.f32.partialorder %v136_v52, 0.0  ;;  %v138_v53 = vmul.f32 0.2, %v136_v52 }
  0x6a   :  { %v139_v54 = vsel %vm137_vm0, %v136_v52, %v138_v53 }
  0x6b   :  { %140 = vst [vmem:[#allocation10] sm:$0x1] %v139_v54 }
  0x6c   :  { %300 = shalt.err (!%p297_p8)
}
  0x6d   :  { %s301_s4 = scalar_lea.hbm %s450_s5, 16 }
  0x6e   :  { %p302_p9 = scmp.ne.s32.totalorder %s450_s5, %s301_s4  ;;  %p305_p10 = scmp.lt.u32.totalorder %s301_s4, %s450_s5 }
  0x70   :  { %p307_p11 = pnand %p305_p10, %p302_p9 }
  0x72   :  { %310 = shalt.err (!%p307_p11)
}
  0x73   :  { %150 = dma.vmem_to_hbm [thread:$0]  %s148_s1, 16, %s450_s5, [#allocation4]  }
  0x74   :  { %317 = dma.done.wait [#allocation4], 16  }
  0x75   :  { %318 = vsyncadd [#allocation4], 4294967280 }
  0x76   :  { %154 = vsyncpa [#allocation3], 1 }
  0x77   :  { %155 = vsyncpa [#allocation6], 1 }
  0x78   :  { %156 = vsyncpa [#allocation9], 1 }
  0x79   :  { %157 = vsyncpa [#allocation4], 1 }

</bundles_post_ra>
